<compile_context>
chip_gen: v5e
topology: v5e:2x2
jax: 0.10.0
libtpu: 0.0.40
codegen_flags: <defaults>
</compile_context>

<pallas_src>
import functools

import jax
import jax.numpy as jnp
from jax.experimental import pallas as pl
from jax.experimental.pallas import tpu as pltpu


# ----------------------------------------------------------------------------
# Path A kernel: one block covers the full spatial extent -> direct mean.
# ----------------------------------------------------------------------------
def _gap_full_hw_kernel(x_ref, o_ref, *, inv_hw):
    x = x_ref[...].astype(jnp.float32)                  # (n_blk, c_blk, HW)
    o_ref[...] = (jnp.sum(x, axis=2) * inv_hw).astype(o_ref.dtype)


# ----------------------------------------------------------------------------
# Path B kernel: spatial axis tiled (grid axis 2, "arbitrary").  Lane-resident
# f32 accumulator; cross-lane reduce + scale only at the finalize step.
# ----------------------------------------------------------------------------
def _gap_tiled_kernel(x_ref, o_ref, acc_ref, *, inv_hw, hw_total, hw_blk,
                      need_mask):
    hw_i = pl.program_id(2)
    last = pl.num_programs(2) - 1

    @pl.when(hw_i == 0)
    def _():
        acc_ref[...] = jnp.zeros_like(acc_ref)

    def accumulate(x):
        # Static 128-lane slices -> pure VPU adds into the lane-resident acc.
        for k in range(hw_blk // 128):
            acc_ref[...] += x[:, :, k * 128:(k + 1) * 128]

    if need_mask:
        # Full tiles: plain accumulate (no mask work).
        @pl.when(hw_i < last)
        def _():
            accumulate(x_ref[...].astype(jnp.float32))

        # Only the last (partial) tile pays for the iota/compare/select.
        @pl.when(hw_i == last)
        def _():
            x = x_ref[...].astype(jnp.float32)
            lane = jax.lax.broadcasted_iota(jnp.int32, (1, 1, hw_blk), 2)
            valid = (hw_i * hw_blk + lane) < hw_total
            accumulate(jnp.where(valid, x, 0.0))
    else:
        accumulate(x_ref[...].astype(jnp.float32))

    @pl.when(hw_i == last)
    def _():
        s = jnp.sum(acc_ref[...], axis=2)   # single 128->1 cross-lane reduce
        o_ref[...] = (s * inv_hw).astype(o_ref.dtype)


# ----------------------------------------------------------------------------
# Wrapper: NCHW input (PyTorch layout) -> (N, C) global average.
# ----------------------------------------------------------------------------
def global_avg_pool2d(x_nchw, *, block_bytes=8 << 20, vmem_limit_bytes=48 << 20):
    N, C, H, W = x_nchw.shape
    HW = H * W
    x = x_nchw.reshape(N, C, HW)            # free reshape: HW stays innermost
    out_dtype = x_nchw.dtype
    itemsize = jnp.dtype(x_nchw.dtype).itemsize
    max_elems = max(block_bytes // itemsize, 8 * 128)

    n_blk = N if N < 8 else 8               # partial last batch tile is safe
    inv_hw = 1.0 / float(HW)

    cost = pl.CostEstimate(
        flops=N * C * HW,
        transcendentals=0,
        bytes_accessed=N * C * HW * itemsize + N * C * itemsize,
    )

    def cparams(sem):
        return pltpu.CompilerParams(dimension_semantics=sem,
                                    vmem_limit_bytes=vmem_limit_bytes)

    # ---- Path A: full spatial extent in one block (preferred). -------------
    c_cap = max_elems // (n_blk * HW)       # max channels/block with full HW
    if C <= c_cap or c_cap >= 128:
        c_blk = C if C <= c_cap else (c_cap // 128) * 128
        # v7x dual-TensorCore: guarantee >= 2 parallel tiles when possible.
        if C > 128 and pl.cdiv(N, n_blk) * pl.cdiv(C, c_blk) == 1:
            c_blk = 128 * pl.cdiv(pl.cdiv(C, 2), 128)
        grid = (pl.cdiv(N, n_blk), pl.cdiv(C, c_blk))
        return pl.pallas_call(
            functools.partial(_gap_full_hw_kernel, inv_hw=inv_hw),
            out_shape=jax.ShapeDtypeStruct((N, C), out_dtype),
            grid_spec=pltpu.PrefetchScalarGridSpec(
                num_scalar_prefetch=0,
                grid=grid,
                in_specs=[pl.BlockSpec((n_blk, c_blk, HW),
                                       lambda n, c: (n, c, 0))],
                out_specs=pl.BlockSpec((n_blk, c_blk), lambda n, c: (n, c)),
            ),
            compiler_params=cparams(("parallel", "parallel")),
            cost_estimate=cost,
        )(x)

    # ---- Path B: tile the spatial (reduction) axis, reduction axis last. ---
    c_blk = C if C < 128 else 128           # multiple of 128 or full C
    hw_cap = max_elems // (n_blk * c_blk)
    hw_blk = max(128, (min(hw_cap, HW) // 128) * 128)
    need_mask = (HW % hw_blk) != 0
    grid = (pl.cdiv(N, n_blk), pl.cdiv(C, c_blk), pl.cdiv(HW, hw_blk))

    kernel = functools.partial(_gap_tiled_kernel, inv_hw=inv_hw, hw_total=HW,
                               hw_blk=hw_blk, need_mask=need_mask)

    return pl.pallas_call(
        kernel,
        out_shape=jax.ShapeDtypeStruct((N, C), out_dtype),
        grid_spec=pltpu.PrefetchScalarGridSpec(
            num_scalar_prefetch=0,
            grid=grid,
            in_specs=[pl.BlockSpec((n_blk, c_blk, hw_blk),
                                   lambda n, c, h: (n, c, h))],
            out_specs=pl.BlockSpec((n_blk, c_blk), lambda n, c, h: (n, c)),
            scratch_shapes=[pltpu.VMEM((n_blk, c_blk, 128), jnp.float32)],
        ),
        compiler_params=cparams(("parallel", "parallel", "arbitrary")),
        cost_estimate=cost,
    )(x)


if __name__ == "__main__":
    key = jax.random.PRNGKey(0)
    k1, k2, k3, k4 = jax.random.split(key, 4)

    # 1) Small NCHW input (Path A: single full-spatial block).
    x1 = jax.random.normal(k1, (2, 4, 16, 16), jnp.float32)
    o1 = global_avg_pool2d(x1)
    jax.block_until_ready(o1)
    r1 = jnp.mean(x1, axis=(2, 3))
    assert o1.shape == (2, 4) and o1.dtype == jnp.float32
    assert jnp.allclose(o1, r1, atol=1e-5, rtol=1e-5)

    # 2) Tiled-spatial path with a partial (masked) last tile: shrink the
    #    block budget so HW=576 splits into 256 + 256 + 64.
    x2 = jax.random.normal(k2, (4, 16, 24, 24), jnp.float32)
    o2 = global_avg_pool2d(x2, block_bytes=64 * 1024)
    jax.block_until_ready(o2)
    r2 = jnp.mean(x2, axis=(2, 3))
    assert o2.shape == (4, 16)
    assert jnp.allclose(o2, r2, atol=1e-5, rtol=1e-5)

    # 3) ResNeSt-style final GAP shape; channels split into two parallel
    #    128-wide tiles (dual-TensorCore sharding path).
    x3 = jax.random.normal(k3, (2, 256, 7, 7), jnp.float32)
    o3 = global_avg_pool2d(x3)
    jax.block_until_ready(o3)
    r3 = jnp.mean(x3, axis=(2, 3))
    assert o3.shape == (2, 256)
    assert jnp.allclose(o3, r3, atol=1e-5, rtol=1e-5)

    # 4) bf16 input: f32 in-kernel accumulation, bf16 output.
    x4 = jax.random.normal(k4, (2, 4, 16, 16), jnp.float32).astype(jnp.bfloat16)
    o4 = global_avg_pool2d(x4)
    jax.block_until_ready(o4)
    r4 = jnp.mean(x4.astype(jnp.float32), axis=(2, 3))
    assert o4.shape == (2, 4) and o4.dtype == jnp.bfloat16
    assert jnp.allclose(o4.astype(jnp.float32), r4, atol=2e-2, rtol=2e-2)

    print("KERNEL_OK")
</pallas_src>

<mosaic_0001>
module attributes {stable_mosaic.version = 11 : i64} {
  func.func @_gap_full_hw_kernel(%arg0: i32, %arg1: i32, %arg2: memref<2x4x256xf32, #tpu.memory_space<vmem>>, %arg3: memref<2x4xf32, #tpu.memory_space<vmem>>) attributes {dimension_semantics = [#tpu.dimension_semantics<parallel>, #tpu.dimension_semantics<parallel>], iteration_bounds = array<i64: 1, 1>, scalar_prefetch = 0 : i64, scratch_operands = 0 : i64, tpu.core_type = #tpu.core_type<tc>, window_params = [{transform_indices = @transform_0, window_bounds = array<i64: 2, 4, 256>}, {transform_indices = @transform_1, window_bounds = array<i64: 2, 4>}]} {
    %c0 = arith.constant 0 : index
    %c0_0 = arith.constant 0 : index
    %c0_1 = arith.constant 0 : index
    %0 = vector.load %arg2[%c0, %c0_0, %c0_1] : memref<2x4x256xf32, #tpu.memory_space<vmem>>, vector<2x4x256xf32>
    %cst = arith.constant dense<0.000000e+00> : vector<2x4xf32>
    %1 = vector.multi_reduction <add>, %0, %cst [2] : vector<2x4x256xf32> to vector<2x4xf32>
    %cst_2 = arith.constant 3.906250e-03 : f32
    %2 = vector.broadcast %cst_2 : f32 to vector<2x4xf32>
    %3 = arith.mulf %1, %2 : vector<2x4xf32>
    %c0_3 = arith.constant 0 : index
    %c0_4 = arith.constant 0 : index
    %4 = vector.load %arg3[%c0_3, %c0_4] : memref<2x4xf32, #tpu.memory_space<vmem>>, vector<2x4xf32>
    tpu.vector_store %arg3[%c0_3, %c0_4], %3 {strides = array<i32>} : memref<2x4xf32, #tpu.memory_space<vmem>>, vector<2x4xf32>,
    return
  }
  func.func @transform_0(%arg0: i32, %arg1: i32) -> (i32, i32, i32) {
    %c0_i32 = arith.constant 0 : i32
    %c0_i32_0 = arith.constant 0 : i32
    return %arg0, %arg1, %c0_i32 : i32, i32, i32
  }
  func.func @transform_1(%arg0: i32, %arg1: i32) -> (i32, i32) {
    %c0_i32 = arith.constant 0 : i32
    return %arg0, %arg1 : i32, i32
  }
}

</mosaic_0001>

<bundles_post_ra>
// kernel: tpu_custom_call.1
= control target key start
LH: loop header
LB: loop body
LE: loop exit
PB: predicated region body
PF: predicated region fallthrough
CT: control target
= control target key end

     0   :  { %6 = vsyncpa [#allocation3], 0  ;;  %s157_s0 = inlined_call_operand.hbm [shape: f32[2,4,256], index: 0, kind: input, shape index: {}]   ;;  %s158_s1 = inlined_call_operand.hbm [shape: f32[2,4], index: 1, kind: output, shape index: {}]  }
   0x1   :  { %7 = vsyncpa [#allocation4], 0  ;;  %s12_s8 = sshll.u32 %s157_s0, 4  ;;  %s137_s9 = smov [#allocation2]   ;;  %s13_s8 = int_to_ptr.hbm [resolvable:$true] %s12_s8 }
   0x2   :  { %s14_s10 = sshll.u32 %s137_s9, 4  ;;  %s138_s11 = smov 128   ;;  %s15_s10 = int_to_ptr.vmem [resolvable:$true] %s14_s10 }
   0x3   :  { %s139_s12 = smov 8  }
   0x4   :  { %20 = dma.hbm_to_vmem [thread:$0]  %s13_s8, 256, %s15_s10, [#allocation3], %s138_s11, %s138_s11, %s139_s12  }
   0x5   :  { %133 = dma.done.wait [#allocation3], 256  }
   0x6   :  { %134 = vsyncadd [#allocation3], 4294967040  ;;  %v25_v0 = vld [vmem:[#allocation2] sm:$0xff]  ;;  %v26_v1 = vld [vmem:[#allocation2 + $0x8] sm:$0xff]  ;;  %vm40_vm0 = vcmask 1043456   ;;  %v55_v13 = vlaneseq  ;;  %s140_s0 = smov [#allocation5]  }
   0x7   :  { %29 = vst [vmem:[#allocation1] ss:$2 sm:$0xff] %v25_v0  ;;  %s69_s13 = sshll.u32 %s140_s0, 4  ;;  %s71_s16 = sshll.u32 %s158_s1, 4  ;;  %vm59_vm1 = vcmask 1041409   ;;  %vm62_vm2 = vcmask 25600   ;;  %s70_s13 = int_to_ptr.vmem [resolvable:$true] %s69_s13  ;;  %s72_s16 = int_to_ptr.hbm [resolvable:$true] %s71_s16 }
   0x8   :  { %33 = vst [vmem:[#allocation1 + $0x10] ss:$2 sm:$0xff] %v26_v1  ;;  %v56_v14 = vand.u32 127, %v55_v13 }
   0xe   :  { %v30_v2 = vld.sshfl [vmem:[#allocation1] sm:$0xff pattern:$0x75316420]  ;;  %v31_v3 = vld.sshfl [vmem:[#allocation1 + $0x8] sm:$0xff pattern:$0x75316420] }
   0xf   :  { %v41_v4 = vsel %vm40_vm0, %v30_v2, 0.0  ;;  %v42_v5 = vsel %vm40_vm0, %v31_v3, 0.0  ;;  %v34_v7 = vld.sshfl [vmem:[#allocation1 + $0x10] sm:$0xff pattern:$0x75316420] }
  0x10   :  { %v43_v6 = vadd.f32 %v42_v5, %v41_v4  ;;  %v35_v8 = vld.sshfl [vmem:[#allocation1 + $0x18] sm:$0xff pattern:$0x75316420]  ;;  %v46_v9 = vsel %vm40_vm0, %v34_v7, 0.0 }
  0x11   :  { %v47_v10 = vsel %vm40_vm0, %v35_v8, 0.0 }
  0x12   :  { %44 = vadd.xlane.f32.xlu0 %v43_v6  ;;  %v48_v11 = vadd.f32 %v47_v10, %v46_v9 }
  0x1a   :  { %49 = vadd.xlane.f32.xlu0 %v48_v11 }
  0x85   :  { %v45_v12 = vpop.xlane.xlu0 %44 }
  0x86   :  { %v51_v15 = vmul.f32 0.00390625, %v45_v12 }
  0x88   :  { %v57_v18 = vperm.slane %v51_v15, %v56_v14 }
  0x8d   :  { %v50_v16 = vpop.xlane.xlu0 %49 }
  0x8e   :  { %v52_v17 = vmul.f32 0.00390625, %v50_v16 }
  0x90   :  { %v58_v19 = vperm.slane %v52_v17, %v56_v14 }
  0x92   :  { %v60_v20 = vsel %vm59_vm1, %v58_v19, %v57_v18 }
  0x93   :  { %63 = vst.msk [vmem:[#allocation5] sm:$0x3] %vm62_vm2, %v60_v20 }
  0x94   :  { %74 = dma.vmem_to_hbm [thread:$0]  %s70_s13, 32, %s72_s16, [#allocation4]  }
  0x95   :  { %135 = dma.done.wait [#allocation4], 32  }
  0x96   :  { %136 = vsyncadd [#allocation4], 4294967264 }
  0x97   :  { %79 = vsyncpa [#allocation3], 1 }
  0x98   :  { %80 = vsyncpa [#allocation4], 1 }

</bundles_post_ra>
